<compile_context>
chip_gen: v5e
topology: v5e:2x2
jax: 0.10.0
libtpu: 0.0.40
codegen_flags: <defaults>
</compile_context>

<pallas_src>
import math
import functools

import jax
import jax.numpy as jnp
from jax import lax
from jax.experimental import pallas as pl
from jax.experimental.pallas import tpu as pltpu


# ----------------------------------------------------------------------------
# Fused kernel: QKV projection -> block-diagonal all-heads attention -> merge
#               -> output fc.  One grid step == one sequence.
# ----------------------------------------------------------------------------
def _fused_mha_kernel(x_ref, wqkv_ref, wfc_ref, o_ref, *, num_head, d_k):
    H, dk = num_head, d_k
    S, F = x_ref.shape[1], x_ref.shape[2]
    R = S * H                                   # block-diagonal row count
    bf16, f32 = jnp.bfloat16, jnp.float32

    def iota_f32(shape, dim):
        return lax.broadcasted_iota(jnp.int32, shape, dim).astype(f32)

    def fdiv(a, m):                             # floor(a / m), exact for small ints
        return jnp.floor(a / float(m))

    def fmod(a, m):                             # a % m
        return a - float(m) * fdiv(a, m)

    x = x_ref[0].astype(bf16)                   # (S, F)
    wqkv = wqkv_ref[...]                        # (F, 3F) bf16, [Wq.T/sqrt(dk) | Wk.T | Wv.T]
    wfc = wfc_ref[...]                          # (F, F)  bf16 = Wfc.T

    # 1) fused QKV projection: one MXU push (scale already folded into Wq).
    qkv = jnp.dot(x, wqkv, preferred_element_type=f32).astype(bf16)          # (S, 3F)

    # 2) replicate every row H times (row s*H+h := row s) via a constant 0/1
    #    matmul -> block-diagonal layout with no reshapes / transposes.
    r_i = lax.broadcasted_iota(jnp.int32, (R, S), 0)
    s_i = lax.broadcasted_iota(jnp.int32, (R, S), 1)
    d_rep = r_i - s_i * H
    rep = jnp.where((d_rep >= 0) & (d_rep < H), f32(1), f32(0)).astype(bf16)  # (R, S)
    qkv_big = jnp.dot(rep, qkv, preferred_element_type=f32).astype(bf16)      # (R, 3F)

    q_big = qkv_big[:, 0 * F:1 * F]                                           # (R, F)
    k_big = qkv_big[:, 1 * F:2 * F]
    v_big = qkv_big[:, 2 * F:3 * F]

    # Keep, in row r = s*H + h, only head h's d_k feature columns of K and V.
    r_head = fmod(iota_f32((R, F), 0), H)       # row's head id  (r % H)
    c_head = fdiv(iota_f32((R, F), 1), dk)      # column's head id (c // d_k)
    head_mask = r_head == c_head
    zeros_bf = jnp.zeros((R, F), bf16)
    k_bd = jnp.where(head_mask, k_big, zeros_bf)
    v_bd = jnp.where(head_mask, v_big, zeros_bf)

    # 3) all-heads scores in ONE push: entry [s*H+h, t*H+g] = Q_g[s] . K_g[t];
    #    only g == h survives the strided mask below.
    scores = lax.dot_general(q_big, k_bd, (((1,), (1,)), ((), ())),
                             preferred_element_type=f32)                      # (R, R)
    sr = fmod(iota_f32((R, R), 0), H)
    sc = fmod(iota_f32((R, R), 1), H)
    scores = jnp.where(sr == sc, scores, f32(-1e30))

    # 4) row softmax == per-head softmax (masked entries underflow to 0).
    scores = scores - jnp.max(scores, axis=-1, keepdims=True)
    p = jnp.exp(scores)
    p = p * pl.reciprocal(jnp.sum(p, axis=-1, keepdims=True), approx=True)
    p = p.astype(bf16)

    # 5) all-heads PV in ONE push: row s*H+h holds head h's output in its own
    #    d_k column block (zeros elsewhere).
    y_flat = jnp.dot(p, v_bd, preferred_element_type=f32).astype(bf16)        # (R, F)

    # 6) merge heads: sum the H rows of each position via a constant 0/1
    #    matmul -> (S, F), already in the PyTorch permute order, lane-dense.
    s2 = lax.broadcasted_iota(jnp.int32, (S, R), 0)
    r2 = lax.broadcasted_iota(jnp.int32, (S, R), 1)
    d_mrg = r2 - s2 * H
    merge = jnp.where((d_mrg >= 0) & (d_mrg < H), f32(1), f32(0)).astype(bf16)  # (S, R)
    y = jnp.dot(merge, y_flat, preferred_element_type=f32).astype(bf16)         # (S, F)

    # 7) output projection (fc, bias=False); dropout is identity in eval mode.
    o_ref[0, :, :] = jnp.dot(y, wfc, preferred_element_type=f32).astype(o_ref.dtype)


# ----------------------------------------------------------------------------
# One-time parameter preparation (hoisted out of the per-call path).
# ----------------------------------------------------------------------------
def prepare_params(params, num_head):
    """Pre-transpose, fuse QKV weights, fold 1/sqrt(d_k) into Wq, cast to bf16."""
    F = params["Wq"].shape[0]
    d_k = F // num_head
    inv_sqrt_dk = 1.0 / math.sqrt(d_k)
    wqkv_t = jnp.concatenate(
        [params["Wq"].T * inv_sqrt_dk, params["Wk"].T, params["Wv"].T],
        axis=1).astype(jnp.bfloat16)                                          # (F, 3F)
    wfc_t = params["Wfc"].T.astype(jnp.bfloat16)                              # (F, F)
    return wqkv_t, wfc_t


# ----------------------------------------------------------------------------
# Wrapper: grid over the (batch of) sequences, weights resident across steps.
# ----------------------------------------------------------------------------
@functools.partial(jax.jit, static_argnames=("num_head",))
def attention_extractor(x, wqkv_t, wfc_t, *, num_head):
    """x: (B, S, F) float32 -> (B, S, F) float32.  B=1 matches the PyTorch module."""
    B, S, F = x.shape
    d_k = F // num_head
    kernel = functools.partial(_fused_mha_kernel, num_head=num_head, d_k=d_k)
    return pl.pallas_call(
        kernel,
        out_shape=jax.ShapeDtypeStruct((B, S, F), jnp.float32),
        grid=(B,),
        in_specs=[
            pl.BlockSpec((1, S, F), lambda b: (b, 0, 0)),        # per-sequence block
            pl.BlockSpec((F, 3 * F), lambda b: (0, 0)),          # resident fused QKV^T
            pl.BlockSpec((F, F), lambda b: (0, 0)),              # resident Wfc^T
        ],
        out_specs=pl.BlockSpec((1, S, F), lambda b: (b, 0, 0)),
        compiler_params=pltpu.CompilerParams(
            dimension_semantics=("parallel",)),
    )(x, wqkv_t, wfc_t)


# ----------------------------------------------------------------------------
# Pure-JAX reference (f32) for the silent correctness check.
# ----------------------------------------------------------------------------
def reference(x, params, num_head):
    B, S, F = x.shape
    d_k = F // num_head
    Q = x @ params["Wq"].T
    K = x @ params["Wk"].T
    V = x @ params["Wv"].T
    to_heads = lambda t: jnp.transpose(t.reshape(B, S, num_head, d_k), (0, 2, 1, 3))
    Qh, Kh, Vh = to_heads(Q), to_heads(K), to_heads(V)
    attn = jnp.einsum("bhqd,bhkd->bhqk", Qh, Kh) / math.sqrt(d_k)
    attn = jax.nn.softmax(attn, axis=-1)
    yh = jnp.einsum("bhqk,bhkd->bhqd", attn, Vh)
    y = jnp.transpose(yh, (0, 2, 1, 3)).reshape(B, S, F)
    return y @ params["Wfc"].T


if __name__ == "__main__":
    num_head = 8
    num_feature = 32          # d_k = 4
    seq_len = 8

    key = jax.random.PRNGKey(0)
    kx, kq, kk, kv, kf, kb = jax.random.split(key, 6)

    scale = 1.0 / math.sqrt(num_feature)
    params = {
        "Wq": jax.random.uniform(kq, (num_feature, num_feature), jnp.float32, -scale, scale),
        "Wk": jax.random.uniform(kk, (num_feature, num_feature), jnp.float32, -scale, scale),
        "Wv": jax.random.uniform(kv, (num_feature, num_feature), jnp.float32, -scale, scale),
        "Wfc": jax.random.uniform(kf, (num_feature, num_feature), jnp.float32, -scale, scale),
    }
    wqkv_t, wfc_t = prepare_params(params, num_head)      # one-time, out of the hot path

    # Module-spec call: batch = 1 (the PyTorch module hardcodes it).
    x1 = jax.random.normal(kx, (1, seq_len, num_feature), dtype=jnp.float32)
    out1 = jax.block_until_ready(attention_extractor(x1, wqkv_t, wfc_t, num_head=num_head))
    ref1 = reference(x1, params, num_head)
    assert out1.shape == (1, seq_len, num_feature)
    # bf16 matmul operands + approx reciprocal -> ~1e-2 scale tolerance.
    assert jnp.allclose(out1, ref1, rtol=2e-2, atol=2e-2), float(jnp.max(jnp.abs(out1 - ref1)))

    # Batched throughput path: grid over independent sequences (parallel axis,
    # amortizes per-call overhead; shards across TensorCores on v7x).
    xb = jax.random.normal(kb, (4, seq_len, num_feature), dtype=jnp.float32)
    outb = jax.block_until_ready(attention_extractor(xb, wqkv_t, wfc_t, num_head=num_head))
    refb = reference(xb, params, num_head)
    assert outb.shape == (4, seq_len, num_feature)
    assert jnp.allclose(outb, refb, rtol=2e-2, atol=2e-2), float(jnp.max(jnp.abs(outb - refb)))

    print("KERNEL_OK")
</pallas_src>

<mosaic_0001>
module attributes {stable_mosaic.version = 11 : i64} {
  func.func @_fused_mha_kernel(%arg0: i32, %arg1: memref<1x8x32xf32, #tpu.memory_space<vmem>>, %arg2: memref<32x96xbf16, #tpu.memory_space<vmem>>, %arg3: memref<32x32xbf16, #tpu.memory_space<vmem>>, %arg4: memref<1x8x32xf32, #tpu.memory_space<vmem>>) attributes {dimension_semantics = [#tpu.dimension_semantics<parallel>], iteration_bounds = array<i64: 1>, scalar_prefetch = 0 : i64, scratch_operands = 0 : i64, tpu.core_type = #tpu.core_type<tc>, window_params = [{transform_indices = @transform_0, window_bounds = array<i64: 1, 8, 32>}, {pipeline_mode = #tpu.pipeline_mode<synchronous>, transform_indices = @transform_1, window_bounds = array<i64: 32, 96>}, {pipeline_mode = #tpu.pipeline_mode<synchronous>, transform_indices = @transform_2, window_bounds = array<i64: 32, 32>}, {transform_indices = @transform_3, window_bounds = array<i64: 1, 8, 32>}]} {
    %c0 = arith.constant 0 : index
    %c0_0 = arith.constant 0 : index
    %c0_1 = arith.constant 0 : index
    %0 = vector.load %arg1[%c0, %c0_0, %c0_1] : memref<1x8x32xf32, #tpu.memory_space<vmem>>, vector<1x8x32xf32>
    %1 = vector.shape_cast %0 : vector<1x8x32xf32> to vector<8x32xf32>
    %2 = arith.truncf %1 : vector<8x32xf32> to vector<8x32xbf16>
    %c0_2 = arith.constant 0 : index
    %c0_3 = arith.constant 0 : index
    %3 = vector.load %arg2[%c0_2, %c0_3] : memref<32x96xbf16, #tpu.memory_space<vmem>>, vector<32x96xbf16>
    %c0_4 = arith.constant 0 : index
    %c0_5 = arith.constant 0 : index
    %4 = vector.load %arg3[%c0_4, %c0_5] : memref<32x32xbf16, #tpu.memory_space<vmem>>, vector<32x32xbf16>
    %cst = arith.constant dense<0.000000e+00> : vector<8x96xf32>
    %5 = tpu.matmul %2, %3, %cst {dimension_numbers = #tpu.dot_dimension_numbers<[1], [0], [0], [1], [0, 0, 1, 1], [], []>} : vector<8x32xbf16>, vector<32x96xbf16>, vector<8x96xf32> -> vector<8x96xf32>
    %6 = arith.truncf %5 : vector<8x96xf32> to vector<8x96xbf16>
    %7 = tpu.iota {dimensions = array<i32: 0>} : vector<64x8xi32>
    %8 = tpu.iota {dimensions = array<i32: 1>} : vector<64x8xi32>
    %c8_i32 = arith.constant 8 : i32
    %9 = vector.broadcast %c8_i32 : i32 to vector<64x8xi32>
    %10 = arith.muli %8, %9 : vector<64x8xi32>
    %11 = arith.subi %7, %10 : vector<64x8xi32>
    %c0_i32 = arith.constant 0 : i32
    %12 = vector.broadcast %c0_i32 : i32 to vector<64x8xi32>
    %13 = arith.cmpi sge, %11, %12 : vector<64x8xi32>
    %c8_i32_6 = arith.constant 8 : i32
    %14 = vector.broadcast %c8_i32_6 : i32 to vector<64x8xi32>
    %15 = arith.cmpi slt, %11, %14 : vector<64x8xi32>
    %16 = arith.andi %13, %15 : vector<64x8xi1>
    %cst_7 = arith.constant 1.000000e+00 : f32
    %cst_8 = arith.constant 0.000000e+00 : f32
    %17 = vector.broadcast %cst_7 : f32 to vector<64x8xf32>
    %18 = vector.broadcast %cst_8 : f32 to vector<64x8xf32>
    %19 = arith.select %16, %17, %18 : vector<64x8xi1>, vector<64x8xf32>
    %20 = arith.truncf %19 : vector<64x8xf32> to vector<64x8xbf16>
    %cst_9 = arith.constant dense<0.000000e+00> : vector<64x96xf32>
    %21 = tpu.matmul %20, %6, %cst_9 {dimension_numbers = #tpu.dot_dimension_numbers<[1], [0], [0], [1], [0, 0, 1, 1], [], []>} : vector<64x8xbf16>, vector<8x96xbf16>, vector<64x96xf32> -> vector<64x96xf32>
    %22 = arith.truncf %21 : vector<64x96xf32> to vector<64x96xbf16>
    %23 = vector.extract_strided_slice %22 {offsets = [0, 0], sizes = [64, 32], strides = [1, 1]} : vector<64x96xbf16> to vector<64x32xbf16>
    %24 = vector.extract_strided_slice %22 {offsets = [0, 32], sizes = [64, 32], strides = [1, 1]} : vector<64x96xbf16> to vector<64x32xbf16>
    %25 = vector.extract_strided_slice %22 {offsets = [0, 64], sizes = [64, 32], strides = [1, 1]} : vector<64x96xbf16> to vector<64x32xbf16>
    %26 = tpu.iota {dimensions = array<i32: 0>} : vector<64x32xi32>
    %27 = arith.sitofp %26 : vector<64x32xi32> to vector<64x32xf32>
    %cst_10 = arith.constant 8.000000e+00 : f32
    %28 = vector.broadcast %cst_10 : f32 to vector<64x32xf32>
    %29 = arith.divf %27, %28 : vector<64x32xf32>
    %30 = math.floor %29 : vector<64x32xf32>
    %cst_11 = arith.constant 8.000000e+00 : f32
    %31 = vector.broadcast %cst_11 : f32 to vector<64x32xf32>
    %32 = arith.mulf %31, %30 : vector<64x32xf32>
    %33 = arith.subf %27, %32 : vector<64x32xf32>
    %34 = tpu.iota {dimensions = array<i32: 1>} : vector<64x32xi32>
    %35 = arith.sitofp %34 : vector<64x32xi32> to vector<64x32xf32>
    %cst_12 = arith.constant 4.000000e+00 : f32
    %36 = vector.broadcast %cst_12 : f32 to vector<64x32xf32>
    %37 = arith.divf %35, %36 : vector<64x32xf32>
    %38 = math.floor %37 : vector<64x32xf32>
    %39 = arith.cmpf oeq, %33, %38 : vector<64x32xf32>
    %cst_13 = arith.constant 0.000000e+00 : bf16
    %40 = vector.broadcast %cst_13 : bf16 to vector<64x32xbf16>
    %41 = arith.select %39, %24, %40 : vector<64x32xi1>, vector<64x32xbf16>
    %42 = arith.select %39, %25, %40 : vector<64x32xi1>, vector<64x32xbf16>
    %cst_14 = arith.constant dense<0.000000e+00> : vector<64x64xf32>
    %43 = tpu.matmul %23, %41, %cst_14 {dimension_numbers = #tpu.dot_dimension_numbers<[1], [1], [0], [0], [0, 0, 1, 0], [], []>} : vector<64x32xbf16>, vector<64x32xbf16>, vector<64x64xf32> -> vector<64x64xf32>
    %44 = tpu.iota {dimensions = array<i32: 0>} : vector<64x64xi32>
    %45 = arith.sitofp %44 : vector<64x64xi32> to vector<64x64xf32>
    %cst_15 = arith.constant 8.000000e+00 : f32
    %46 = vector.broadcast %cst_15 : f32 to vector<64x64xf32>
    %47 = arith.divf %45, %46 : vector<64x64xf32>
    %48 = math.floor %47 : vector<64x64xf32>
    %cst_16 = arith.constant 8.000000e+00 : f32
    %49 = vector.broadcast %cst_16 : f32 to vector<64x64xf32>
    %50 = arith.mulf %49, %48 : vector<64x64xf32>
    %51 = arith.subf %45, %50 : vector<64x64xf32>
    %52 = tpu.iota {dimensions = array<i32: 1>} : vector<64x64xi32>
    %53 = arith.sitofp %52 : vector<64x64xi32> to vector<64x64xf32>
    %cst_17 = arith.constant 8.000000e+00 : f32
    %54 = vector.broadcast %cst_17 : f32 to vector<64x64xf32>
    %55 = arith.divf %53, %54 : vector<64x64xf32>
    %56 = math.floor %55 : vector<64x64xf32>
    %cst_18 = arith.constant 8.000000e+00 : f32
    %57 = vector.broadcast %cst_18 : f32 to vector<64x64xf32>
    %58 = arith.mulf %57, %56 : vector<64x64xf32>
    %59 = arith.subf %53, %58 : vector<64x64xf32>
    %60 = arith.cmpf oeq, %51, %59 : vector<64x64xf32>
    %cst_19 = arith.constant -1.000000e+30 : f32
    %61 = vector.broadcast %cst_19 : f32 to vector<64x64xf32>
    %62 = arith.select %60, %43, %61 : vector<64x64xi1>, vector<64x64xf32>
    %cst_20 = arith.constant dense<0xFF800000> : vector<64xf32>
    %63 = vector.multi_reduction <maximumf>, %62, %cst_20 [1] : vector<64x64xf32> to vector<64xf32>
    %64 = vector.shape_cast %63 : vector<64xf32> to vector<64x1xf32>
    %65 = vector.broadcast %64 : vector<64x1xf32> to vector<64x64xf32>
    %66 = arith.subf %62, %65 : vector<64x64xf32>
    %67 = math.exp %66 : vector<64x64xf32>
    %cst_21 = arith.constant dense<0.000000e+00> : vector<64xf32>
    %68 = vector.multi_reduction <add>, %67, %cst_21 [1] : vector<64x64xf32> to vector<64xf32>
    %69 = vector.shape_cast %68 : vector<64xf32> to vector<64x1xf32>
    %70 = tpu.reciprocal %69 {approx = true} : vector<64x1xf32> -> vector<64x1xf32>
    %71 = vector.broadcast %70 : vector<64x1xf32> to vector<64x64xf32>
    %72 = arith.mulf %67, %71 : vector<64x64xf32>
    %73 = arith.truncf %72 : vector<64x64xf32> to vector<64x64xbf16>
    %cst_22 = arith.constant dense<0.000000e+00> : vector<64x32xf32>
    %74 = tpu.matmul %73, %42, %cst_22 {dimension_numbers = #tpu.dot_dimension_numbers<[1], [0], [0], [1], [0, 0, 1, 1], [], []>} : vector<64x64xbf16>, vector<64x32xbf16>, vector<64x32xf32> -> vector<64x32xf32>
    %75 = arith.truncf %74 : vector<64x32xf32> to vector<64x32xbf16>
    %76 = tpu.iota {dimensions = array<i32: 0>} : vector<8x64xi32>
    %77 = tpu.iota {dimensions = array<i32: 1>} : vector<8x64xi32>
    %c8_i32_23 = arith.constant 8 : i32
    %78 = vector.broadcast %c8_i32_23 : i32 to vector<8x64xi32>
    %79 = arith.muli %76, %78 : vector<8x64xi32>
    %80 = arith.subi %77, %79 : vector<8x64xi32>
    %c0_i32_24 = arith.constant 0 : i32
    %81 = vector.broadcast %c0_i32_24 : i32 to vector<8x64xi32>
    %82 = arith.cmpi sge, %80, %81 : vector<8x64xi32>
    %c8_i32_25 = arith.constant 8 : i32
    %83 = vector.broadcast %c8_i32_25 : i32 to vector<8x64xi32>
    %84 = arith.cmpi slt, %80, %83 : vector<8x64xi32>
    %85 = arith.andi %82, %84 : vector<8x64xi1>
    %cst_26 = arith.constant 1.000000e+00 : f32
    %cst_27 = arith.constant 0.000000e+00 : f32
    %86 = vector.broadcast %cst_26 : f32 to vector<8x64xf32>
    %87 = vector.broadcast %cst_27 : f32 to vector<8x64xf32>
    %88 = arith.select %85, %86, %87 : vector<8x64xi1>, vector<8x64xf32>
    %89 = arith.truncf %88 : vector<8x64xf32> to vector<8x64xbf16>
    %cst_28 = arith.constant dense<0.000000e+00> : vector<8x32xf32>
    %90 = tpu.matmul %89, %75, %cst_28 {dimension_numbers = #tpu.dot_dimension_numbers<[1], [0], [0], [1], [0, 0, 1, 1], [], []>} : vector<8x64xbf16>, vector<64x32xbf16>, vector<8x32xf32> -> vector<8x32xf32>
    %91 = arith.truncf %90 : vector<8x32xf32> to vector<8x32xbf16>
    %cst_29 = arith.constant dense<0.000000e+00> : vector<8x32xf32>
    %92 = tpu.matmul %91, %4, %cst_29 {dimension_numbers = #tpu.dot_dimension_numbers<[1], [0], [0], [1], [0, 0, 1, 1], [], []>} : vector<8x32xbf16>, vector<32x32xbf16>, vector<8x32xf32> -> vector<8x32xf32>
    %c0_30 = arith.constant 0 : index
    %c0_31 = arith.constant 0 : index
    %c0_32 = arith.constant 0 : index
    %93 = vector.load %arg4[%c0_30, %c0_31, %c0_32] : memref<1x8x32xf32, #tpu.memory_space<vmem>>, vector<1x8x32xf32>
    %94 = vector.shape_cast %93 : vector<1x8x32xf32> to vector<8x32xf32>
    %95 = vector.shape_cast %92 : vector<8x32xf32> to vector<1x8x32xf32>
    tpu.vector_store %arg4[%c0_30, %c0_31, %c0_32], %95 {strides = array<i32>} : memref<1x8x32xf32, #tpu.memory_space<vmem>>, vector<1x8x32xf32>,
    return
  }
  func.func @transform_0(%arg0: i32) -> (i32, i32, i32) {
    %c0_i32 = arith.constant 0 : i32
    %c0_i32_0 = arith.constant 0 : i32
    %c0_i32_1 = arith.constant 0 : i32
    return %arg0, %c0_i32, %c0_i32_0 : i32, i32, i32
  }
  func.func @transform_1(%arg0: i32) -> (i32, i32) {
    %c0_i32 = arith.constant 0 : i32
    %c0_i32_0 = arith.constant 0 : i32
    %c0_i32_1 = arith.constant 0 : i32
    return %c0_i32, %c0_i32_0 : i32, i32
  }
  func.func @transform_2(%arg0: i32) -> (i32, i32) {
    %c0_i32 = arith.constant 0 : i32
    %c0_i32_0 = arith.constant 0 : i32
    %c0_i32_1 = arith.constant 0 : i32
    return %c0_i32, %c0_i32_0 : i32, i32
  }
  func.func @transform_3(%arg0: i32) -> (i32, i32, i32) {
    %c0_i32 = arith.constant 0 : i32
    %c0_i32_0 = arith.constant 0 : i32
    %c0_i32_1 = arith.constant 0 : i32
    return %arg0, %c0_i32, %c0_i32_0 : i32, i32, i32
  }
}

</mosaic_0001>

<bundles_post_ra>
// kernel: attention_extractor.1
= control target key start
LH: loop header
LB: loop body
LE: loop exit
PB: predicated region body
PF: predicated region fallthrough
CT: control target
= control target key end

     0   :  { %8 = vsyncpa [#allocation3], 0  ;;  %s1420_s0 = inlined_call_operand.hbm [shape: f32[1,8,32], index: 0, kind: input, shape index: {}]   ;;  %s1421_s1 = inlined_call_operand.hbm [shape: bf16[32,96], index: 1, kind: input, shape index: {}]   ;;  %s1422_s2 = inlined_call_operand.hbm [shape: bf16[32,32], index: 2, kind: input, shape index: {}]   ;;  %s1423_s3 = inlined_call_operand.hbm [shape: f32[1,8,32], index: 3, kind: output, shape index: {}]  }
   0x1   :  { %9 = vsyncpa [#allocation6], 0  ;;  %s26_s14 = sshll.u32 %s1421_s1, 4  ;;  %s27_s14 = int_to_ptr.hbm [resolvable:$true] %s26_s14 }
   0x2   :  { %10 = vsyncpa [#allocation4], 0  ;;  %s1005_s15 = smov [#allocation5]   ;;  %s16_s19 = sshll.u32 %s1420_s0, 4  ;;  %s17_s19 = int_to_ptr.hbm [resolvable:$true] %s16_s19 }
   0x3   :  { %s28_s16 = sshll.u32 %s1005_s15, 4  ;;  %s1006_s20 = smov 64   ;;  %s29_s16 = int_to_ptr.vmem [resolvable:$true] %s28_s16 }
   0x4   :  { %s1007_s21 = smov 4   ;;  %s1008_s22 = smov [#allocation2]  }
   0x5   :  { %34 = dma.hbm_to_vmem [thread:$0]  %s27_s14, 256, %s29_s16, [#allocation6], %s1006_s20, %s1006_s20, %s1007_s21  }
   0x6   :  { %s18_s23 = sshll.u32 %s1008_s22, 4  ;;  %s39_s1 = sshll.u32 %s1422_s2, 4  ;;  %s19_s23 = int_to_ptr.vmem [resolvable:$true] %s18_s23  ;;  %s40_s1 = int_to_ptr.hbm [resolvable:$true] %s39_s1 }
   0x7   :  { %21 = dma.hbm_to_vmem [thread:$0]  %s17_s19, 128, %s19_s23, [#allocation3]  }
   0x8   :  { %s1009_s26 = smov [#allocation7]  }
   0x9   :  { %s41_s27 = sshll.u32 %s1009_s26, 4  ;;  %s42_s27 = int_to_ptr.vmem [resolvable:$true] %s41_s27 }
   0xa   :  { %47 = dma.hbm_to_vmem [thread:$0]  %s40_s1, 256, %s42_s27, [#allocation6], %s1006_s20, %s1006_s20, %s1007_s21  }
   0xb   :  { %999 = dma.done.wait [#allocation3], 128  }
   0xc   :  { %1000 = vsyncadd [#allocation3], 4294967168 }
   0xd   :  { %1001 = dma.done.wait [#allocation6], 512  }
   0xe   :  { %1002 = vsyncadd [#allocation6], 4294966784  ;;  %v103_v0 = vlaneseq  ;;  %v1010_v1 = vmov 8.0   ;;  %v1011_v2 = vmov 4.0   ;;  %v848_v5 = vld [vmem:[#allocation5 + $0x8] sm:$0xff]  ;;  %v847_v8 = vld [vmem:[#allocation5] sm:$0xff] }
   0xf   :  { %867 = vrcp.f32 %v1010_v1  ;;  %95 = vmatpush.bf16.msra.mxu0 %v848_v5  ;;  %v63_v9 = vld [vmem:[#allocation2] sm:$0xff]  ;;  %vm85_vm0 = vcmask 261120   ;;  %v1012_v30 = vmov 0   ;;  %s1013_s0 = smov 32   ;;  %s1015_s2 = smov 96  }
  0x10   :  { %869 = vrcp.f32 %v1011_v2  ;;  %v1050_v3 = vshrl.u32 %v103_v0, 7  ;;  %v1055_v12 = vand.u32 127, %v103_v0  ;;  %v64_v15 = vpack.c.bf16 %v63_v9, %v63_v9  ;;  %s1016_s28 = smov [#allocation8]   ;;  %s805_s5 = sshll.u32 %s1423_s3, 4  ;;  %s806_s5 = int_to_ptr.hbm [resolvable:$true] %s805_s5 }
  0x11   :  { %s803_s29 = sshll.u32 %s1016_s28, 4  ;;  %s804_s29 = int_to_ptr.vmem [resolvable:$true] %s803_s29 }
  0x12   :  { %v1053_v10 = vadd.s32 48, %v1050_v3  ;;  %v1059_v20 = vcvt.s32.f32 %v1055_v12  ;;  %v1078_v32 = vadd.s32 56, %v1050_v3  ;;  %v1081_v33 = vadd.s32 32, %v1050_v3 }
  0x13   :  { %96 = vmatpush.bf16.msra.mxu0 %v847_v8  ;;  %v1088_v42 = vadd.s32 40, %v1050_v3  ;;  %v213_v45 = vcvt.s32.f32 %v1050_v3  ;;  %v105_v53 = vadd.s32 8, %v1050_v3  ;;  %v1131_v63 = vmul.u32 8, %v1055_v12 }
  0x14   :  { %v219_v17 = vcvt.s32.f32 %v1053_v10  ;;  %v220_v34 = vcvt.s32.f32 %v1078_v32  ;;  %v217_v35 = vcvt.s32.f32 %v1081_v33 }
  0x15   :  { %v868_v4 = vpop.eup %867  ;;  %v218_v46 = vcvt.s32.f32 %v1088_v42  ;;  %v214_v57 = vcvt.s32.f32 %v105_v53  ;;  %v115_v2 = vsub.s32 %v1050_v3, %v1131_v63 }
  0x16   :  { %v870_v6 = vpop.eup %869  ;;  %v222_v7 = vmul.f32 8.0, %v868_v4  ;;  %vm226_vm1 = vweird.f32 %v868_v4  ;;  %824 = vmatmul.msk.bf16.vlgmr.msra.gmra.mxu0 %vm85_vm0, %v64_v15 }
  0x17   :  { %v262_v11 = vmul.f32 4.0, %v870_v6  ;;  %vm266_vm2 = vweird.f32 %v870_v6  ;;  %vm123_vm15 = vcmp.ge.s32.totalorder %v115_v2, 0 }
  0x18   :  { %v223_v13 = vsub.f32 1.0, %v222_v7  ;;  %v1014_v7 = vmov 0.0  }
  0x19   :  { %v263_v14 = vsub.f32 1.0, %v262_v11 }
  0x1a   :  { %v224_v16 = vmul.f32 %v868_v4, %v223_v13  ;;  %v106_v13 = vadd.s32 16, %v1050_v3 }
  0x1b   :  { %v264_v18 = vmul.f32 %v870_v6, %v263_v14  ;;  %v107_v14 = vadd.s32 24, %v1050_v3 }
  0x1c   :  { %v225_v19 = vadd.f32 %v868_v4, %v224_v16 }
  0x1d   :  { %v265_v21 = vadd.f32 %v870_v6, %v264_v18  ;;  %v118_v18 = vsub.s32 %v107_v14, %v1131_v63 }
  0x1e   :  { %v1062_v22 = vsel %vm226_vm1, %v868_v4, %v225_v19  ;;  %v116_v4 = vsub.s32 %v105_v53, %v1131_v63  ;;  %vm131_vm1 = vcmp.lt.s32.totalorder %v115_v2, 8  ;;  %v1199_v2 = vunpack.c.h.b16 %v1012_v30 }
  0x1f   :  { %v234_v23 = vmul.f32 %v1062_v22, %v219_v17  ;;  %v267_v24 = vsel %vm266_vm2, %v870_v6, %v265_v21  ;;  %v235_v36 = vmul.f32 %v1062_v22, %v220_v34  ;;  %v232_v37 = vmul.f32 %v1062_v22, %v217_v35 }
  0x20   :  { %v268_v25 = vmul.f32 %v267_v24, %v1059_v20  ;;  %v228_v47 = vmul.f32 %v1062_v22, %v213_v45  ;;  %v233_v48 = vmul.f32 %v1062_v22, %v218_v46  ;;  %v229_v59 = vmul.f32 %v1062_v22, %v214_v57 }
  0x21   :  { %v242_v26 = vfloor.f32 %v234_v23  ;;  %v243_v38 = vfloor.f32 %v235_v36  ;;  %v240_v39 = vfloor.f32 %v232_v37  ;;  %vm124_vm2 = vcmp.ge.s32.totalorder %v116_v4, 0 }
  0x22   :  { %v1066_v28 = vfloor.f32 %v268_v25  ;;  %v236_v50 = vfloor.f32 %v228_v47  ;;  %v241_v52 = vfloor.f32 %v233_v48  ;;  %v237_v61 = vfloor.f32 %v229_v59 }
  0x23   :  { %v250_v27 = vmul.f32 8.0, %v242_v26  ;;  %v251_v40 = vmul.f32 8.0, %v243_v38  ;;  %v248_v41 = vmul.f32 8.0, %v240_v39  ;;  %v215_v21 = vcvt.s32.f32 %v106_v13 }
  0x24   :  { %v244_v54 = vmul.f32 8.0, %v236_v50  ;;  %v249_v55 = vmul.f32 8.0, %v241_v52  ;;  %v245_v0 = vmul.f32 8.0, %v237_v61  ;;  %v216_v36 = vcvt.s32.f32 %v107_v14 }
  0x25   :  { %v1068_v29 = vsub.f32 %v219_v17, %v250_v27  ;;  %v1090_v43 = vsub.f32 %v220_v34, %v251_v40  ;;  %v1092_v44 = vsub.f32 %v217_v35, %v248_v41  ;;  %v117_v17 = vsub.s32 %v106_v13, %v1131_v63 }
  0x26   :  { %v1113_v56 = vsub.f32 %v213_v45, %v244_v54  ;;  %v1115_v58 = vsub.f32 %v218_v46, %v249_v55  ;;  %v1135_v1 = vsub.f32 %v214_v57, %v245_v0  ;;  %v230_v23 = vmul.f32 %v1062_v22, %v215_v21 }
  0x27   :  { %vm276_vm3 = vcmp.eq.f32.partialorder %v1068_v29, %v1066_v28  ;;  %vm277_vm5 = vcmp.eq.f32.partialorder %v1090_v43, %v1066_v28  ;;  %vm274_vm6 = vcmp.eq.f32.partialorder %v1092_v44, %v1066_v28  ;;  %v119_v37 = vsub.s32 %v1081_v33, %v1131_v63 }
  0x28   :  { %vm284_vm4 = vmpackc.low %vm276_vm3, %vm276_vm3  ;;  %vm270_vm9 = vcmp.eq.f32.partialorder %v1113_v56, %v1066_v28  ;;  %vm275_vm11 = vcmp.eq.f32.partialorder %v1115_v58, %v1066_v28  ;;  %vm271_vm13 = vcmp.eq.f32.partialorder %v1135_v1, %v1066_v28  ;;  %vm132_vm3 = vcmp.lt.s32.totalorder %v116_v4, 8 }
  0x29   :  { %v1073_v31 = vsel %vm284_vm4, 65537, %v1012_v30  ;;  %vm285_vm7 = vmpackc.low %vm277_vm5, %vm277_vm5  ;;  %v238_v24 = vfloor.f32 %v230_v23  ;;  %v231_v38 = vmul.f32 %v1062_v22, %v216_v36  ;;  %v120_v39 = vsub.s32 %v1088_v42, %v1131_v63 }
  0x2a   :  { %306 = vrot.lane.b32.xlu0 %v1073_v31, %s1013_s0  ;;  %v1103_v49 = vsel %vm285_vm7, 65537, %v1012_v30  ;;  %vm282_vm8 = vmpackc.low %vm274_vm6, %vm274_vm6  ;;  %vm172_vm6 = vcmask 1043456   ;;  %vm159_vm7 = vcmask 64512   ;;  %v121_v50 = vsub.s32 %v1053_v10, %v1131_v63 }
  0x2b   :  { %v1108_v51 = vsel %vm282_vm8, 65537, %v1012_v30  ;;  %vm278_vm10 = vmpackc.low %vm270_vm9, %vm270_vm9  ;;  %vm125_vm8 = vcmp.ge.s32.totalorder %v117_v17, 0  ;;  %vm133_vm9 = vcmp.lt.s32.totalorder %v117_v17, 8  ;;  %v246_v27 = vmul.f32 8.0, %v238_v24 }
  0x2c   :  { %302 = vrot.lane.b32.xlu1 %v1108_v51, %s1013_s0  ;;  %v1123_v60 = vsel %vm278_vm10, 65537, %v1012_v30  ;;  %vm283_vm12 = vmpackc.low %vm275_vm11, %vm275_vm11  ;;  %vm126_vm10 = vcmp.ge.s32.totalorder %v118_v18, 0  ;;  %vm134_vm11 = vcmp.lt.s32.totalorder %v118_v18, 8  ;;  %v239_v41 = vfloor.f32 %v231_v38 }
  0x2d   :  { %v1128_v62 = vsel %vm283_vm12, 65537, %v1012_v30  ;;  %vm279_vm14 = vmpackc.low %vm271_vm13, %vm271_vm13  ;;  %v1157_v35 = vsub.f32 %v215_v21, %v246_v27  ;;  %v122_v52 = vsub.s32 %v1078_v32, %v1131_v63  ;;  %v1196_v0 = vunpack.c.l.b16 %v1012_v30 }
  0x2e   :  { %v1143_v5 = vsel %vm279_vm14, 65537, %v1012_v30  ;;  %vm139_vm4 = vmand %vm123_vm15, %vm131_vm1  ;;  %vm127_vm1 = vcmp.ge.s32.totalorder %v119_v37, 0  ;;  %v247_v33 = vmul.f32 8.0, %v239_v41 }
  0x2f   :  { %vm140_vm5 = vmand %vm124_vm2, %vm132_vm3  ;;  %v147_v8 = vsel %vm139_vm4, 1.0, %v1014_v7  ;;  %vm272_vm14 = vcmp.eq.f32.partialorder %v1157_v35, %v1066_v28  ;;  %vm135_vm2 = vcmp.lt.s32.totalorder %v119_v37, 8  ;;  %vm128_vm3 = vcmp.ge.s32.totalorder %v120_v39, 0 }
  0x30   :  { %v148_v9 = vsel %vm140_vm5, 1.0, %v1014_v7  ;;  %vm141_vm12 = vmand %vm125_vm8, %vm133_vm9  ;;  %vm136_vm4 = vcmp.lt.s32.totalorder %v120_v39, 8  ;;  %v1172_v45 = vsub.f32 %v216_v36, %v247_v33 }
  0x31   :  { %v155_v16 = vpack.c.bf16 %v148_v9, %v147_v8  ;;  %vm142_vm13 = vmand %vm126_vm10, %vm134_vm11  ;;  %v149_v25 = vsel %vm141_vm12, 1.0, %v1014_v7  ;;  %vm129_vm10 = vcmp.ge.s32.totalorder %v121_v50, 0  ;;  %vm137_vm11 = vcmp.lt.s32.totalorder %v121_v50, 8 }
  0x32   :  { %308 = vrot.lane.b32.xlu0 %v1103_v49, %s1013_s0  ;;  %v150_v26 = vsel %vm142_vm13, 1.0, %v1014_v7  ;;  %vm280_vm15 = vmpackc.low %vm272_vm14, %vm272_vm14  ;;  %vm273_vm8 = vcmp.eq.f32.partialorder %v1172_v45, %v1066_v28  ;;  %vm130_vm12 = vcmp.ge.s32.totalorder %v122_v52, 0  ;;  %vm138_vm13 = vcmp.lt.s32.totalorder %v122_v52, 8 }
  0x33   :  { %v156_v34 = vpack.c.bf16 %v150_v26, %v149_v25  ;;  %v1168_v40 = vsel %vm280_vm15, 65537, %v1012_v30  ;;  %vm143_vm5 = vmand %vm127_vm1, %vm135_vm2 }
  0x34   :  { %304 = vrot.lane.b32.xlu1 %v1128_v62, %s1013_s0  ;;  %298 = vrot.lane.b32.xlu2 %v1168_v40, %s1013_s0  ;;  %vm281_vm9 = vmpackc.low %vm273_vm8, %vm273_vm8  ;;  %v151_v46 = vsel %vm143_vm5, 1.0, %v1014_v7 }
  0x35   :  { %v1177_v42 = vsel %vm281_vm9, 65537, %v1012_v30  ;;  %vm145_vm14 = vmand %vm129_vm10, %vm137_vm11 }
  0x36   :  { %vm146_vm15 = vmand %vm130_vm12, %vm138_vm13  ;;  %v153_v28 = vsel %vm145_vm14, 1.0, %v1014_v7 }
  0x37   :  { %v154_v53 = vsel %vm146_vm15, 1.0, %v1014_v7 }
  0x38   :  { %v158_v54 = vpack.c.bf16 %v154_v53, %v153_v28 }
  0x3a   :  { %294 = vrot.lane.b32.xlu0 %v1123_v60, %s1013_s0 }
  0x3c   :  { %296 = vrot.lane.b32.xlu1 %v1143_v5, %s1013_s0  ;;  %300 = vrot.lane.b32.xlu2 %v1177_v42, %s1013_s0 }
  0x8e   :  { %v299_v10 = vpop.permute.xlu2 %298 }
  0x8f   :  { %v324_v59 = vunpack.c.l.b16 %v299_v10  ;;  %v325_v61 = vunpack.c.h.b16 %v299_v10 }
  0x91   :  { %vm328_vm1 = vcmp.ne.s32.totalorder %v324_v59, %v1196_v0 }
  0x93   :  { %v98_v6 = vpop.f32.mrf.mxu0 }
  0x94   :  { %v102_v11 = vpack.c.bf16 %v98_v6, %v98_v6 }
  0x96   :  { %v174_v15 = vsel %vm172_vm6, %v102_v11, 0  ;;  %vm144_vm6 = vmand %vm128_vm3, %vm136_vm4  ;;  %v301_v32 = vpop.permute.xlu2 %300 }
  0x97   :  { %183 = vmatpush.bf16.msra.mxu1 %v174_v15  ;;  %v152_v47 = vsel %vm144_vm6, 1.0, %v1014_v7  ;;  %v331_v4 = vunpack.c.l.b16 %v301_v32  ;;  %v332_v6 = vunpack.c.h.b16 %v301_v32 }
  0x98   :  { %v157_v48 = vpack.c.bf16 %v152_v47, %v151_v46 }
  0x99   :  { %vm335_vm2 = vcmp.ne.s32.totalorder %v331_v4, %v1196_v0  ;;  %vm336_vm3 = vcmp.ne.s32.totalorder %v332_v6, %v1199_v2 }
  0x9a   :  { %825 = vmatmul.msk.bf16.vlgmr.msra.gmra.mxu1 %vm159_vm7, %v155_v16  ;;  %vm337_vm5 = vmpackc.low %vm336_vm3, %vm335_vm2 }
  0x9b   :  { %v100_v19 = vpop.f32.mrf.mxu0 }
  0x9c   :  { %v307_v18 = vpop.permute.xlu0 %306 }
  0x9d   :  { %v352_v47 = vunpack.c.l.b16 %v307_v18 }
  0x9e   :  { %v303_v9 = vpop.permute.xlu1 %302 }
  0x9f   :  { %v338_v19 = vunpack.c.l.b16 %v303_v9  ;;  %v339_v21 = vunpack.c.h.b16 %v303_v9  ;;  %vm1226_vm13 = vcmp.ne.s32.totalorder %v352_v47, %v1196_v0 }
  0xa1   :  { %vm342_vm6 = vcmp.ne.s32.totalorder %v338_v19, %v1196_v0  ;;  %vm343_vm8 = vcmp.ne.s32.totalorder %v339_v21, %v1199_v2 }
  0xa2   :  { %vm344_vm11 = vmpackc.low %vm343_vm8, %vm342_vm6 }
  0xa4   :  { %v309_v38 = vpop.permute.xlu0 %308 }
  0xa5   :  { %v359_v50 = vunpack.c.l.b16 %v309_v38  ;;  %v360_v28 = vunpack.c.h.b16 %v309_v38 }
  0xa6   :  { %v305_v23 = vpop.permute.xlu1 %304 }
  0xa7   :  { %v345_v25 = vunpack.c.l.b16 %v305_v23  ;;  %v346_v26 = vunpack.c.h.b16 %v305_v23  ;;  %vm1236_vm15 = vcmp.ne.s32.totalorder %v359_v50, %v1196_v0 }
  0xa9   :  { %vm349_vm9 = vcmp.ne.s32.totalorder %v345_v25, %v1196_v0  ;;  %vm350_vm10 = vcmp.ne.s32.totalorder %v346_v26, %v1199_v2 }
  0xaa   :  { %826 = vmatmul.msk.bf16.gmra.mxu1 %vm159_vm7, %v156_v34  ;;  %vm351_vm12 = vmpackc.low %vm350_vm10, %vm349_vm9 }
  0xac   :  { %v295_v32 = vpop.permute.xlu0 %294 }
  0xad   :  { %v310_v6 = vunpack.c.l.b16 %v295_v32  ;;  %v311_v9 = vunpack.c.h.b16 %v295_v32 }
  0xae   :  { %v297_v53 = vpop.permute.xlu1 %296 }
  0xaf   :  { %vm315_vm6 = vcmp.ne.s32.totalorder %v311_v9, %v1199_v2 }
  0xba   :  { %827 = vmatmul.msk.bf16.gmra.mxu1 %vm159_vm7, %v157_v48  ;;  %v353_v48 = vunpack.c.h.b16 %v307_v18 }
  0xbc   :  { %vm1231_vm14 = vcmp.ne.s32.totalorder %v353_v48, %v1199_v2 }
  0xca   :  { %828 = vmatmul.msk.bf16.gmra.mxu1 %vm159_vm7, %v158_v54  ;;  %vm329_vm7 = vcmp.ne.s32.totalorder %v325_v61, %v1199_v2  ;;  %v317_v61 = vunpack.c.l.b16 %v297_v53 }
  0xcb   :  { %vm330_vm4 = vmpackc.low %vm329_vm7, %vm328_vm1  ;;  %vm1241_vm1 = vcmp.ne.s32.totalorder %v360_v28, %v1199_v2 }
  0xcc   :  { %vm358_vm7 = vmpackc.low %vm1231_vm14, %vm1226_vm13  ;;  %vm321_vm3 = vcmp.ne.s32.totalorder %v317_v61, %v1196_v0 }
  0xcd   :  { %vm365_vm2 = vmpackc.low %vm1241_vm1, %vm1236_vm15 }
 0x117   :  { %v1191_v55 = vpop.f32.mrf.mxu1 }
 0x118   :  { %v1271_v18 = vpack.c.bf16 %v1191_v55, %v1191_v55 }
 0x11a   :  { %v462_v50 = vunpack.c.l.b16 %v1271_v18 }
 0x11f   :  { %v1193_v57 = vpop.f32.mrf.mxu1 }
 0x127   :  { %v190_v63 = vpop.f32.mrf.mxu1 }
 0x128   :  { %v1203_v8 = vpack.c.bf16 %v190_v63, %v190_v63  ;;  %v318_v63 = vunpack.c.h.b16 %v297_v53 }
 0x12a   :  { %v368_v13 = vsel %vm330_vm4, %v1203_v8, 0  ;;  %vm322_vm4 = vcmp.ne.s32.totalorder %v318_v63, %v1199_v2 }
 0x12b   :  { %v484_v15 = vunpack.c.l.b16 %v368_v13  ;;  %vm323_vm8 = vmpackc.low %vm322_vm4, %vm321_vm3 }
 0x12f   :  { %v192_v11 = vpop.f32.mrf.mxu1 }
 0x130   :  { %v1208_v30 = vpack.c.bf16 %v192_v11, %v192_v11 }
 0x132   :  { %v369_v14 = vsel %vm337_vm5, %v1208_v30, 0  ;;  %vm314_vm5 = vcmp.ne.s32.totalorder %v310_v6, %v1196_v0  ;;  %v465_v47 = vunpack.c.l.b16 %v1208_v30 }
 0x133   :  { %v485_v16 = vunpack.c.l.b16 %v369_v14  ;;  %vm316_vm9 = vmpackc.low %vm315_vm6, %vm314_vm5 }
 0x134   :  { %v366_v23 = vsel %vm316_vm9, %v1271_v18, 0 }
 0x135   :  { %v491_v17 = vpack.c.b16 %v485_v16, %v484_v15  ;;  %v1266_v15 = vpack.c.bf16 %v1193_v57, %v1193_v57  ;;  %v482_v57 = vunpack.c.l.b16 %v366_v23 }
 0x137   :  { %496 = vrot.lane.b32.xlu1 %v491_v17, %s1015_s2  ;;  %v195_v24 = vpop.f32.mrf.mxu1  ;;  %v367_v21 = vsel %vm323_vm8, %v1266_v15, 0  ;;  %vm575_vm8 = vcmask 523264  }
 0x138   :  { %v1216_v27 = vpack.c.bf16 %v195_v24, %v195_v24  ;;  %v483_v24 = vunpack.c.l.b16 %v367_v21 }
 0x13a   :  { %v370_v36 = vsel %vm344_vm11, %v1216_v27, 0  ;;  %v490_v25 = vpack.c.b16 %v483_v24, %v482_v57 }
 0x13b   :  { %v486_v41 = vunpack.c.l.b16 %v370_v36 }
 0x13f   :  { %376 = vrot.lane.b32.xlu1 %v1143_v5, %s1006_s20  ;;  %v197_v34 = vpop.f32.mrf.mxu1 }
 0x140   :  { %v1221_v37 = vpack.c.bf16 %v197_v34, %v197_v34 }
 0x142   :  { %v371_v39 = vsel %vm351_vm12, %v1221_v37, 0 }
 0x143   :  { %v487_v33 = vunpack.c.l.b16 %v371_v39 }
 0x145   :  { %v492_v46 = vpack.c.b16 %v487_v33, %v486_v41 }
 0x147   :  { %498 = vrot.lane.b32.xlu0 %v492_v46, %s1015_s2  ;;  %v200_v52 = vpop.f32.mrf.mxu1  ;;  %v463_v46 = vunpack.c.l.b16 %v1266_v15 }
 0x148   :  { %v1245_v4 = vpack.c.bf16 %v200_v52, %v200_v52  ;;  %v464_v52 = vunpack.c.l.b16 %v1203_v8 }
 0x149   :  { %v470_v54 = vpack.c.b16 %v463_v46, %v462_v50 }
 0x14a   :  { %v372_v13 = vsel %vm358_vm7, %v1245_v4, 0  ;;  %v471_v10 = vpack.c.b16 %v465_v47, %v464_v52 }
 0x14f   :  { %374 = vrot.lane.b32.xlu0 %v1123_v60, %s1006_s20  ;;  %v202_v11 = vpop.f32.mrf.mxu1  ;;  %v488_v60 = vunpack.c.l.b16 %v372_v13  ;;  %v467_v13 = vunpack.c.l.b16 %v1221_v37 }
 0x150   :  { %v1260_v14 = vpack.c.bf16 %v202_v11, %v202_v11 }
 0x152   :  { %v373_v16 = vsel %vm365_vm2, %v1260_v14, 0  ;;  %v469_v57 = vunpack.c.l.b16 %v1260_v14 }
 0x153   :  { %v489_v17 = vunpack.c.l.b16 %v373_v16 }
 0x155   :  { %v493_v19 = vpack.c.b16 %v489_v17, %v488_v60  ;;  %v466_v60 = vunpack.c.l.b16 %v1216_v27 }
 0x157   :  { %500 = vrot.lane.b32.xlu2 %v493_v19, %s1015_s2  ;;  %v472_v23 = vpack.c.b16 %v467_v13, %v466_v60 }
 0x15f   :  { %494 = vrot.lane.b32.xlu2 %v490_v25, %s1015_s2  ;;  %v468_v25 = vunpack.c.l.b16 %v1245_v4 }
 0x167   :  { %386 = vrot.lane.b32.xlu2 %v1073_v31, %s1006_s20 }
 0x16f   :  { %388 = vrot.lane.b32.xlu2 %v1103_v49, %s1006_s20 }
 0x177   :  { %382 = vrot.lane.b32.xlu2 %v1108_v51, %s1006_s20 }
 0x17f   :  { %384 = vrot.lane.b32.xlu2 %v1128_v62, %s1006_s20 }
 0x187   :  { %378 = vrot.lane.b32.xlu2 %v1168_v40, %s1006_s20 }
 0x18f   :  { %380 = vrot.lane.b32.xlu2 %v1177_v42, %s1006_s20 }
 0x1a9   :  { %v497_v51 = vpop.permute.xlu1 %496 }
 0x1aa   :  { %v518_v40 = vsel %vm85_vm0, %v497_v51, 0 }
 0x1b1   :  { %v501_v55 = vpop.permute.xlu2 %500 }
 0x1b2   :  { %v524_v26 = vsel %vm85_vm0, %v501_v55, 0  ;;  %v473_v55 = vpack.c.b16 %v469_v57, %v468_v25 }
 0x1b3   :  { %530 = vmatpush.bf16.xpose.msrb.mxu1 %v524_v26  ;;  %851 = vmatpush.bf16.xpose.msra.mxu2 %v524_v26 }
 0x1b9   :  { %v499_v31 = vpop.permute.xlu0 %498  ;;  %v495_v34 = vpop.permute.xlu2 %494 }
 0x1ba   :  { %v521_v49 = vsel %vm85_vm0, %v499_v31, 0  ;;  %v515_v33 = vsel %vm85_vm0, %v495_v34, 0 }
 0x1bb   :  { %531 = vmatpush.bf16.xpose.msrb.mxu1 %v521_v49  ;;  %852 = vmatpush.bf16.xpose.msra.mxu2 %v521_v49 }
 0x1c1   :  { %v387_v36 = vpop.permute.xlu2 %386  ;;  %v375_v52 = vpop.permute.xlu0 %374 }
 0x1c2   :  { %v432_v62 = vunpack.c.l.b16 %v387_v36  ;;  %v433_v38 = vunpack.c.h.b16 %v387_v36 }
 0x1c3   :  { %532 = vmatpush.bf16.xpose.msrb.mxu1 %v518_v40  ;;  %853 = vmatpush.bf16.xpose.msra.mxu2 %v518_v40 }
 0x1c4   :  { %vm436_vm10 = vcmp.ne.s32.totalorder %v432_v62, %v1196_v0  ;;  %vm437_vm11 = vcmp.ne.s32.totalorder %v433_v38, %v1199_v2 }
 0x1c5   :  { %vm438_vm12 = vmpackc.low %vm437_vm11, %vm436_vm10 }
 0x1c6   :  { %v452_v48 = vsel %vm438_vm12, %v1245_v4, 0 }
 0x1c7   :  { %v682_v53 = vunpack.c.l.b16 %v452_v48 }
 0x1c9   :  { %v389_v42 = vpop.permute.xlu2 %388 }
 0x1ca   :  { %v439_v39 = vunpack.c.l.b16 %v389_v42  ;;  %v440_v41 = vunpack.c.h.b16 %v389_v42 }
 0x1cb   :  { %533 = vmatpush.bf16.xpose.msrb.mxu1 %v515_v33  ;;  %854 = vmatpush.bf16.xpose.msra.mxu2 %v515_v33 }
 0x1cc   :  { %vm443_vm13 = vcmp.ne.s32.totalorder %v439_v39, %v1196_v0  ;;  %vm444_vm14 = vcmp.ne.s32.totalorder %v440_v41, %v1199_v2 }
 0x1cd   :  { %vm445_vm15 = vmpackc.low %vm444_vm14, %vm443_vm13 }
 0x1ce   :  { %v453_v28 = vsel %vm445_vm15, %v1260_v14, 0 }
 0x1cf   :  { %v683_v5 = vunpack.c.l.b16 %v453_v28  ;;  %v390_v28 = vunpack.c.l.b16 %v375_v52 }
 0x1d1   :  { %v383_v32 = vpop.permute.xlu2 %382  ;;  %v687_v59 = vpack.c.b16 %v683_v5, %v682_v53  ;;  %v391_v53 = vunpack.c.h.b16 %v375_v52 }
 0x1d2   :  { %v418_v61 = vunpack.c.l.b16 %v383_v32  ;;  %v419_v63 = vunpack.c.h.b16 %v383_v32  ;;  %829 = vmatmul.msk.bf16.vlgmr.msrb.gmra.mxu1 %vm85_vm0, %v470_v54  ;;  %830 = vmatmul.msk.bf16.vlgmr.msra.gmra.mxu2 %vm85_vm0, %v471_v10 }
 0x1d3   :  { %694 = vrot.lane.b32.xlu2 %v687_v59, %s1006_s20 }
 0x1d4   :  { %vm422_vm1 = vcmp.ne.s32.totalorder %v418_v61, %v1196_v0  ;;  %vm423_vm7 = vcmp.ne.s32.totalorder %v419_v63, %v1199_v2 }
 0x1d5   :  { %vm424_vm2 = vmpackc.low %vm423_vm7, %vm422_vm1  ;;  %vm394_vm1 = vcmp.ne.s32.totalorder %v390_v28, %v1196_v0  ;;  %vm395_vm7 = vcmp.ne.s32.totalorder %v391_v53, %v1199_v2 }
 0x1d6   :  { %v450_v16 = vsel %vm424_vm2, %v1216_v27, 0 }
 0x1d7   :  { %v680_v19 = vunpack.c.l.b16 %v450_v16 }
 0x1d9   :  { %v385_v6 = vpop.permute.xlu2 %384 }
 0x1da   :  { %v425_v9 = vunpack.c.l.b16 %v385_v6  ;;  %v426_v11 = vunpack.c.h.b16 %v385_v6 }
 0x1dc   :  { %vm429_vm3 = vcmp.ne.s32.totalorder %v425_v9, %v1196_v0  ;;  %vm430_vm4 = vcmp.ne.s32.totalorder %v426_v11, %v1199_v2 }
 0x1dd   :  { %vm431_vm5 = vmpackc.low %vm430_vm4, %vm429_vm3 }
 0x1de   :  { %v451_v17 = vsel %vm431_vm5, %v1221_v37, 0  ;;  %v555_v37 = vmul.f32 %v1059_v20, %v1062_v22  ;;  %vm396_vm4 = vmpackc.low %vm395_vm7, %vm394_vm1 }
 0x1df   :  { %v681_v21 = vunpack.c.l.b16 %v451_v17 }
 0x1e0   :  { %v556_v34 = vfloor.f32 %v555_v37 }
 0x1e1   :  { %v1314_v24 = vpack.c.b16 %v681_v21, %v680_v19  ;;  %v1320_v26 = vpop.permute.xlu2 %378 }
 0x1e2   :  { %831 = vmatmul.msk.bf16.gmra.mxu2 %vm85_vm0, %v472_v23  ;;  %v557_v49 = vmul.f32 8.0, %v556_v34 }
 0x1e4   :  { %v558_v51 = vsub.f32 %v1059_v20, %v557_v49  ;;  %v404_v49 = vunpack.c.l.b16 %v1320_v26 }
 0x1e6   :  { %vm559_vm6 = vcmp.eq.f32.partialorder %v1113_v56, %v558_v51  ;;  %vm561_vm9 = vcmp.eq.f32.partialorder %v1157_v35, %v558_v51  ;;  %vm560_vm10 = vcmp.eq.f32.partialorder %v1135_v1, %v558_v51  ;;  %vm562_vm11 = vcmp.eq.f32.partialorder %v1172_v45, %v558_v51 }
 0x1e7   :  { %vm563_vm12 = vcmp.eq.f32.partialorder %v1092_v44, %v558_v51  ;;  %vm564_vm13 = vcmp.eq.f32.partialorder %v1115_v58, %v558_v51  ;;  %vm565_vm14 = vcmp.eq.f32.partialorder %v1068_v29, %v558_v51  ;;  %vm566_vm15 = vcmp.eq.f32.partialorder %v1090_v43, %v558_v51  ;;  %v377_v58 = vpop.permute.xlu1 %376 }
 0x1e8   :  { %v397_v10 = vunpack.c.l.b16 %v377_v58  ;;  %v398_v32 = vunpack.c.h.b16 %v377_v58  ;;  %v446_v43 = vsel %vm396_vm4, %v1271_v18, 0  ;;  %v405_v51 = vunpack.c.h.b16 %v1320_v26 }
 0x1e9   :  { %v1322_v31 = vpop.permute.xlu2 %380  ;;  %v676_v61 = vunpack.c.l.b16 %v446_v43 }
 0x1ea   :  { %vm401_vm2 = vcmp.ne.s32.totalorder %v397_v10, %v1196_v0  ;;  %vm402_vm3 = vcmp.ne.s32.totalorder %v398_v32, %v1199_v2  ;;  %v411_v37 = vunpack.c.l.b16 %v1322_v31  ;;  %v412_v34 = vunpack.c.h.b16 %v1322_v31 }
 0x1eb   :  { %vm403_vm5 = vmpackc.low %vm402_vm3, %vm401_vm2 }
 0x1ec   :  { %v447_v59 = vsel %vm403_vm5, %v1266_v15, 0 }
 0x1ed   :  { %v677_v63 = vunpack.c.l.b16 %v447_v59 }
 0x1ef   :  { %v684_v6 = vpack.c.b16 %v677_v63, %v676_v61 }
 0x1f2   :  { %832 = vmatmul.msk.bf16.gmra.mxu2 %vm85_vm0, %v473_v55 }
 0x22d   :  { %v695_v27 = vpop.permute.xlu2 %694 }
 0x22e   :  { %716 = vmatpush.bf16.msra.mxu3 %v695_v27 }
 0x24f   :  { %v535_v4 = vpop.f32.mrf.mxu1 }
 0x250   :  { %v567_v14 = vsel %vm559_vm6, %v535_v4, -1e+30  ;;  %vm415_vm6 = vcmp.ne.s32.totalorder %v411_v37, %v1196_v0 }
 0x251   :  { %v576_v36 = vsel %vm575_vm8, %v567_v14, -inf }
 0x252   :  { %577 = vmax.xlane.f32.xlu0 %v576_v36 }
 0x255   :  { %v540_v62 = vpop.f32.mrf.mxu2 }
 0x256   :  { %v569_v38 = vsel %vm561_vm9, %v540_v62, -1e+30  ;;  %vm416_vm9 = vcmp.ne.s32.totalorder %v412_v34, %v1199_v2 }
 0x257   :  { %v537_v40 = vpop.f32.mrf.mxu1  ;;  %v582_v22 = vsel %vm575_vm8, %v569_v38, -inf }
 0x258   :  { %v568_v42 = vsel %vm560_vm10, %v537_v40, -1e+30  ;;  %583 = vmax.xlane.f32.xlu2 %v582_v22  ;;  %vm408_vm10 = vcmp.ne.s32.totalorder %v404_v49, %v1196_v0 }
 0x259   :  { %v579_v20 = vsel %vm575_vm8, %v568_v42, -inf }
 0x25a   :  { %580 = vmax.xlane.f32.xlu1 %v579_v20 }
 0x25d   :  { %v542_v56 = vpop.f32.mrf.mxu2 }
 0x25e   :  { %v1334_v39 = vsel %vm562_vm11, %v542_v56, -1e+30  ;;  %vm409_vm11 = vcmp.ne.s32.totalorder %v405_v51, %v1199_v2 }
 0x25f   :  { %v585_v35 = vsel %vm575_vm8, %v1334_v39, -inf }
 0x260   :  { %586 = vmax.xlane.f32.xlu0 %v585_v35 }
 0x265   :  { %v545_v1 = vpop.f32.mrf.mxu2 }
 0x266   :  { %v1339_v41 = vsel %vm563_vm12, %v545_v1, -1e+30  ;;  %vm417_vm12 = vmpackc.low %vm416_vm9, %vm415_vm6 }
 0x267   :  { %v588_v33 = vsel %vm575_vm8, %v1339_v41, -inf  ;;  %v449_v36 = vsel %vm417_vm12, %v1208_v30, 0 }
 0x268   :  { %589 = vmax.xlane.f32.xlu1 %v588_v33  ;;  %v679_v26 = vunpack.c.l.b16 %v449_v36 }
 0x26d   :  { %v547_v46 = vpop.f32.mrf.mxu2 }
 0x26e   :  { %v1344_v45 = vsel %vm564_vm13, %v547_v46, -1e+30  ;;  %vm410_vm13 = vmpackc.low %vm409_vm11, %vm408_vm10 }
 0x26f   :  { %v591_v47 = vsel %vm575_vm8, %v1344_v45, -inf  ;;  %v448_v62 = vsel %vm410_vm13, %v1203_v8, 0 }
 0x270   :  { %592 = vmax.xlane.f32.xlu2 %v591_v47 }
 0x275   :  { %v550_v48 = vpop.f32.mrf.mxu2 }
 0x276   :  { %v1349_v44 = vsel %vm565_vm14, %v550_v48, -1e+30 }
 0x277   :  { %v594_v50 = vsel %vm575_vm8, %v1349_v44, -inf }
 0x278   :  { %595 = vmax.xlane.f32.xlu2 %v594_v50 }
 0x27d   :  { %v552_v5 = vpop.f32.mrf.mxu2 }
 0x27e   :  { %v1354_v54 = vsel %vm566_vm15, %v552_v5, -1e+30 }
 0x27f   :  { %v597_v29 = vsel %vm575_vm8, %v1354_v54, -inf }
 0x280   :  { %598 = vmax.xlane.f32.xlu0 %v597_v29 }
 0x290   :  { %688 = vrot.lane.b32.xlu2 %v684_v6, %s1006_s20 }
 0x2c5   :  { %v578_v9 = vpop.xlane.xlu0 %577 }
 0x2c6   :  { %v600_v11 = vsub.f32 %v567_v14, %v578_v9 }
 0x2c8   :  { %v608_v13 = vmul.f32 1.442695, %v600_v11 }
 0x2ca   :  { %871 = vpow2.f32 %v608_v13 }
 0x2cb   :  { %v584_v16 = vpop.xlane.xlu2 %583 }
 0x2cc   :  { %v602_v60 = vsub.f32 %v569_v38, %v584_v16  ;;  %v678_v38 = vunpack.c.l.b16 %v448_v62 }
 0x2cd   :  { %v581_v17 = vpop.xlane.xlu1 %580 }
 0x2ce   :  { %v612_v19 = vmul.f32 1.442695, %v602_v60  ;;  %v601_v21 = vsub.f32 %v568_v42, %v581_v17  ;;  %v685_v40 = vpack.c.b16 %v679_v26, %v678_v38 }
 0x2d0   :  { %v1365_v23 = vpop.eup %871  ;;  %873 = vpow2.f32 %v612_v19  ;;  %v610_v18 = vmul.f32 1.442695, %v601_v21 }
 0x2d1   :  { %v624_v15 = vsel %vm575_vm8, %v1365_v23, 0.0 }
 0x2d2   :  { %875 = vpow2.f32 %v610_v18  ;;  %625 = vadd.xlane.f32.xlu1 %v624_v15 }
 0x2d3   :  { %v587_v22 = vpop.xlane.xlu0 %586 }
 0x2d4   :  { %v603_v8 = vsub.f32 %v1334_v39, %v587_v22 }
 0x2d6   :  { %v1369_v57 = vpop.eup %873  ;;  %v614_v35 = vmul.f32 1.442695, %v603_v8 }
 0x2d7   :  { %v630_v25 = vsel %vm575_vm8, %v1369_v57, 0.0 }
 0x2d8   :  { %v1373_v55 = vpop.eup %875  ;;  %631 = vadd.xlane.f32.xlu2 %v630_v25 }
 0x2d9   :  { %v627_v27 = vsel %vm575_vm8, %v1373_v55, 0.0 }
 0x2da   :  { %628 = vadd.xlane.f32.xlu0 %v627_v27 }
 0x2db   :  { %v590_v30 = vpop.xlane.xlu1 %589 }
 0x2dc   :  { %v604_v42 = vsub.f32 %v1339_v41, %v590_v30 }
 0x2de   :  { %v616_v20 = vmul.f32 1.442695, %v604_v42 }
 0x2e3   :  { %v593_v4 = vpop.xlane.xlu2 %592 }
 0x2e4   :  { %v605_v14 = vsub.f32 %v1344_v45, %v593_v4 }
 0x2e6   :  { %v618_v31 = vmul.f32 1.442695, %v605_v14 }
 0x2e8   :  { %877 = vpow2.f32 %v618_v31 }
 0x2e9   :  { %879 = vpow2.f32 %v616_v20  ;;  %v850_v20 = vld [vmem:[#allocation7 + $0x8] sm:$0xff] }
 0x2ea   :  { %881 = vpow2.f32 %v614_v35 }
 0x2eb   :  { %692 = vrot.lane.b32.xlu1 %v1314_v24, %s1006_s20  ;;  %v596_v24 = vpop.xlane.xlu2 %595 }
 0x2ec   :  { %v606_v33 = vsub.f32 %v1349_v44, %v596_v24 }
 0x2ee   :  { %v1390_v0 = vpop.eup %877  ;;  %690 = vrot.lane.b32.xlu0 %v685_v40, %s1006_s20  ;;  %v620_v47 = vmul.f32 1.442695, %v606_v33  ;;  %v745_v40 = vmul.u32 8, %v1050_v3  ;;  %v849_v3 = vld [vmem:[#allocation7] sm:$0xff] }
 0x2ef   :  { %v639_v2 = vsel %vm575_vm8, %v1390_v0, 0.0  ;;  %v880_v45 = vpop.eup %879 }
 0x2f0   :  { %640 = vadd.xlane.f32.xlu2 %v639_v2  ;;  %v882_v48 = vpop.eup %881  ;;  %v636_v50 = vsel %vm575_vm8, %v880_v45, 0.0  ;;  %v746_v22 = vsub.s32 %v1055_v12, %v745_v40 }
 0x2f1   :  { %v633_v39 = vsel %vm575_vm8, %v882_v48, 0.0 }
 0x2f2   :  { %vm747_vm14 = vcmp.ge.s32.totalorder %v746_v22, 0  ;;  %vm748_vm15 = vcmp.lt.s32.totalorder %v746_v22, 8 }
 0x2f3   :  { %v599_v56 = vpop.xlane.xlu0 %598  ;;  %v689_v43 = vpop.permute.xlu2 %688  ;;  %vm749_vm1 = vmand %vm747_vm14, %vm748_vm15 }
 0x2f4   :  { %v607_v1 = vsub.f32 %v1354_v54, %v599_v56  ;;  %v750_v8 = vsel %vm749_vm1, 1.0, %v1014_v7 }
 0x2f5   :  { %v751_v35 = vpack.c.bf16 %v750_v8, %v750_v8 }
 0x2f6   :  { %v622_v46 = vmul.f32 1.442695, %v607_v1 }
 0x2f8   :  { %883 = vpow2.f32 %v622_v46 }
 0x2f9   :  { %885 = vpow2.f32 %v620_v47 }
 0x2fe   :  { %v884_v41 = vpop.eup %883 }
 0x2ff   :  { %v886_v52 = vpop.eup %885  ;;  %v645_v58 = vsel %vm575_vm8, %v884_v41, 0.0 }
 0x300   :  { %v642_v28 = vsel %vm575_vm8, %v886_v52, 0.0 }
 0x315   :  { %637 = vadd.xlane.f32.xlu1 %v636_v50 }
 0x318   :  { %634 = vadd.xlane.f32.xlu0 %v633_v39 }
 0x31d   :  { %646 = vadd.xlane.f32.xlu1 %v645_v58 }
 0x320   :  { %643 = vadd.xlane.f32.xlu0 %v642_v28 }
 0x345   :  { %v626_v44 = vpop.xlane.xlu1 %625 }
 0x34b   :  { %v632_v63 = vpop.xlane.xlu2 %631 }
 0x34d   :  { %v629_v53 = vpop.xlane.xlu0 %628 }
 0x34e   :  { %887 = vrcp.f32 %v629_v53 }
 0x34f   :  { %889 = vrcp.f32 %v626_v44 }
 0x350   :  { %891 = vrcp.f32 %v632_v63 }
 0x354   :  { %v888_v54 = vpop.eup %887 }
 0x355   :  { %v890_v32 = vpop.eup %889  ;;  %v657_v29 = vmul.f32 %v888_v54, %v1373_v55 }
 0x356   :  { %v656_v59 = vmul.f32 %v890_v32, %v1365_v23  ;;  %v892_v9 = vpop.eup %891 }
 0x357   :  { %v658_v13 = vmul.f32 %v892_v9, %v1369_v57 }
 0x358   :  { %v664_v61 = vpack.c.bf16 %v657_v29, %v656_v59 }
 0x35d   :  { %v693_v5 = vpop.permute.xlu1 %692 }
 0x35e   :  { %717 = vmatpush.bf16.msra.mxu3 %v693_v5 }
 0x360   :  { %v691_v10 = vpop.permute.xlu0 %690 }
 0x362   :  { %718 = vmatpush.bf16.msra.mxu3 %v691_v10 }
 0x363   :  { %v641_v19 = vpop.xlane.xlu2 %640 }
 0x366   :  { %719 = vmatpush.bf16.msra.mxu3 %v689_v43 }
 0x369   :  { %833 = vmatmul.msk.bf16.vlgmr.msra.gmra.mxu3 %vm575_vm8, %v664_v61 }
 0x388   :  { %v638_v60 = vpop.xlane.xlu1 %637 }
 0x38b   :  { %v635_v6 = vpop.xlane.xlu0 %634 }
 0x38c   :  { %893 = vrcp.f32 %v635_v6 }
 0x38d   :  { %895 = vrcp.f32 %v638_v60 }
 0x38e   :  { %897 = vrcp.f32 %v641_v19 }
 0x390   :  { %v647_v27 = vpop.xlane.xlu1 %646 }
 0x392   :  { %v894_v11 = vpop.eup %893 }
 0x393   :  { %v659_v16 = vmul.f32 %v894_v11, %v882_v48  ;;  %v896_v21 = vpop.eup %895  ;;  %v644_v25 = vpop.xlane.xlu0 %643 }
 0x394   :  { %v898_v23 = vpop.eup %897  ;;  %v660_v18 = vmul.f32 %v896_v21, %v880_v45  ;;  %899 = vrcp.f32 %v644_v25 }
 0x395   :  { %v665_v17 = vpack.c.bf16 %v659_v16, %v658_v13  ;;  %v661_v15 = vmul.f32 %v898_v23, %v1390_v0  ;;  %901 = vrcp.f32 %v647_v27 }
 0x397   :  { %834 = vmatmul.msk.bf16.gmra.mxu3 %vm575_vm8, %v665_v17  ;;  %v666_v55 = vpack.c.bf16 %v661_v15, %v660_v18 }
 0x39a   :  { %v900_v57 = vpop.eup %899 }
 0x39b   :  { %v902_v37 = vpop.eup %901  ;;  %v662_v34 = vmul.f32 %v900_v57, %v886_v52 }
 0x39c   :  { %v663_v49 = vmul.f32 %v902_v37, %v884_v41 }
 0x39e   :  { %v667_v51 = vpack.c.bf16 %v663_v49, %v662_v34 }
 0x3a7   :  { %835 = vmatmul.msk.bf16.gmra.mxu3 %vm575_vm8, %v666_v55 }
 0x3b7   :  { %836 = vmatmul.msk.bf16.gmra.mxu3 %vm575_vm8, %v667_v51 }
 0x3ec   :  { %v721_v4 = vpop.f32.mrf.mxu3 }
 0x3f4   :  { %v723_v14 = vpop.f32.mrf.mxu3 }
 0x3f5   :  { %v741_v56 = vpack.c.bf16 %v723_v14, %v721_v4 }
 0x41a   :  { %v726_v36 = vpop.f32.mrf.mxu3 }
 0x422   :  { %v728_v31 = vpop.f32.mrf.mxu3 }
 0x423   :  { %v742_v42 = vpack.c.bf16 %v728_v31, %v726_v36 }
 0x42a   :  { %v731_v62 = vpop.f32.mrf.mxu3 }
 0x432   :  { %v733_v26 = vpop.f32.mrf.mxu3 }
 0x433   :  { %v743_v30 = vpack.c.bf16 %v733_v26, %v731_v62 }
 0x43a   :  { %v736_v38 = vpop.f32.mrf.mxu3 }
 0x442   :  { %v738_v0 = vpop.f32.mrf.mxu3 }
 0x443   :  { %v744_v2 = vpack.c.bf16 %v738_v0, %v736_v38 }
 0x445   :  { %759 = vmatpush.bf16.msrb.mxu0 %v744_v2 }
 0x449   :  { %760 = vmatpush.bf16.msrb.mxu0 %v743_v30 }
 0x44d   :  { %761 = vmatpush.bf16.msrb.mxu0 %v742_v42 }
 0x451   :  { %762 = vmatpush.bf16.msrb.mxu0 %v741_v56 }
 0x454   :  { %837 = vmatmul.msk.bf16.vlgmr.msrb.gmra.mxu0 %vm575_vm8, %v751_v35 }
 0x455   :  { %790 = vmatpush.bf16.msra.mxu0 %v850_v20 }
 0x459   :  { %791 = vmatpush.bf16.msra.mxu0 %v849_v3 }
 0x4d1   :  { %v764_v12 = vpop.f32.mrf.mxu0 }
 0x4d2   :  { %v768_v24 = vpack.c.bf16 %v764_v12, %v764_v12 }
 0x4d4   :  { %846 = vmatmul.msk.bf16.vlgmr.msra.gmra.mxu0 %vm85_vm0, %v768_v24 }
 0x4d9   :  { %v766_v1 = vpop.f32.mrf.mxu0 }
 0x551   :  { %v793_v7 = vpop.f32.mrf.mxu0 }
 0x552   :  { %797 = vst.msk [vmem:[#allocation8] sm:$0xff] %vm85_vm0, %v793_v7 }
 0x553   :  { %808 = dma.vmem_to_hbm [thread:$0]  %s804_s29, 128, %s806_s5, [#allocation4]  }
 0x559   :  { %v795_v33 = vpop.f32.mrf.mxu0 }
 0x55a   :  { %1003 = dma.done.wait [#allocation4], 128  }
 0x55b   :  { %1004 = vsyncadd [#allocation4], 4294967168 }
 0x55c   :  { %813 = vsyncpa [#allocation3], 1 }
 0x55d   :  { %814 = vsyncpa [#allocation6], 1 }
 0x55e   :  { %815 = vsyncpa [#allocation4], 1 }

</bundles_post_ra>
